<compile_context>
chip_gen: v5e
topology: v5e:2x2
jax: 0.10.0
libtpu: 0.0.40
codegen_flags: <defaults>
</compile_context>

<pallas_src>
import jax
import jax.numpy as jnp
from jax import lax
from jax.experimental import pallas as pl
from jax.experimental.pallas import tpu as pltpu


def _round_up(x, m):
    return ((x + m - 1) // m) * m


def _batch_block(B, M, E, budget_bytes=16 << 20):
    """Largest divisor of B whose double-buffered kernel-1 footprint fits VMEM."""
    R = 7 * M + 2 * E
    per_b = (3 * M * E + R * E) * 4 * 2          # f32, 2x (double buffered) in+out
    bb = max(1, min(B, budget_bytes // max(per_b, 1)))
    while B % bb:
        bb -= 1
    return bb


# --------------------------------------------------------------------------
# Kernel 1: builds z3 = rows [c | m | q | c*q | c*m | |c-q| | |c-m| | cwq | cwm]
# as a (BB, 7*M + 2*E, E) slab. Row-major flatten of z3 == PyTorch z exactly.
# --------------------------------------------------------------------------
def _feature_kernel(c_ref, m_ref, q_ref, w_ref, b_ref, z_ref):
    BB, M, E = c_ref.shape

    c = c_ref[...]
    m = m_ref[...]
    q = q_ref[...]

    # Seven element-wise segments — natural full-width (BB, M, E) stores.
    z_ref[:, pl.ds(0 * M, M), :] = c
    z_ref[:, pl.ds(1 * M, M), :] = m
    z_ref[:, pl.ds(2 * M, M), :] = q
    z_ref[:, pl.ds(3 * M, M), :] = c * q
    z_ref[:, pl.ds(4 * M, M), :] = c * m
    z_ref[:, pl.ds(5 * M, M), :] = jnp.abs(c - q)
    z_ref[:, pl.ds(6 * M, M), :] = jnp.abs(c - m)

    # weighted_c for the whole block in ONE MXU matmul: (BB*M, E) @ W^T + b.
    w = w_ref[...]                              # (E, E), PyTorch (out, in)
    b = b_ref[...]                              # (1, E)
    c2 = c.reshape(BB * M, E)                   # minor dim unchanged -> cheap
    wc2 = lax.dot_general(c2, w, (((1,), (1,)), ((), ())),
                          preferred_element_type=jnp.float32) + b

    # Per-batch contractions over M. Each batch element is an independent
    # (M,E)x(M,E) matmul, so batching would not reduce MXU passes; BB is small
    # and static, and every store below is a dense (E, E) block.
    # TODO(synk): switch to one batched dot_general ('bme,bmf->bef') once that
    #             middle-dim contraction is confirmed to lower on all targets.
    off = 7 * M
    for bb in range(BB):
        wcb = wc2[bb * M:(bb + 1) * M]                                   # (M, E)
        cwq = lax.dot_general(wcb, q[bb], (((0,), (0,)), ((), ())),
                              preferred_element_type=jnp.float32)        # (E, E)
        cwm = lax.dot_general(wcb, m[bb], (((0,), (0,)), ((), ())),
                              preferred_element_type=jnp.float32)        # (E, E)
        z_ref[pl.ds(bb, 1), pl.ds(off, E), :] = cwq[None]
        z_ref[pl.ds(bb, 1), pl.ds(off + E, E), :] = cwm[None]


# --------------------------------------------------------------------------
# Kernel 2: tiled  h = tanh(z @ W1^T + b1) ;  partial_n = h_n @ w2_n^T
# grid = (N tiles, K tiles), K last ('arbitrary'), N 'parallel'.
# --------------------------------------------------------------------------
def _fnn_kernel(z_ref, w1_ref, b1_ref, w2_ref, part_ref, acc_ref):
    k = pl.program_id(1)

    @pl.when(k == 0)
    def _():
        acc_ref[...] = jnp.zeros_like(acc_ref)

    acc_ref[...] += lax.dot_general(
        z_ref[...], w1_ref[...], (((1,), (1,)), ((), ())),
        preferred_element_type=jnp.float32)                 # (B, TN)

    @pl.when(k == pl.num_programs(1) - 1)
    def _():
        h = jnp.tanh(acc_ref[...] + b1_ref[...])            # (B, TN) (EUP)
        part_ref[0] = lax.dot_general(
            h, w2_ref[...], (((1,), (1,)), ((), ())),
            preferred_element_type=jnp.float32)             # (B, 1)


# --------------------------------------------------------------------------
# One-time parameter preparation (call OUTSIDE jit): pad W1/b1/w2 to S_pad.
# --------------------------------------------------------------------------
def prepare_params(params):
    w, b, w1, b1, w2, b2 = params
    E = w.shape[0]
    S = w1.shape[1]
    TK = min(512, _round_up(S, 128))
    S_pad = _round_up(S, TK)
    w1p = jnp.pad(w1, ((0, S_pad - S), (0, S_pad - S)))
    b1p = jnp.pad(b1, (0, S_pad - S)).reshape(1, S_pad)
    w2p = jnp.pad(w2, ((0, 0), (0, S_pad - S)))
    return (w, b.reshape(1, E), w1p, b1p, w2p, b2.reshape(1, 1))


def feature_vector_forward(c, m, q, padded_params):
    w, b, w1p, b1p, w2p, b2 = padded_params
    B, M, E = c.shape
    R = 7 * M + 2 * E
    S = R * E                                   # 7*M*E + 2*E*E
    S_pad = w1p.shape[1]
    TN = TK = 512 if S_pad >= 512 else S_pad    # S_pad % TK == 0 by construction

    # ---- kernel 1: z emitted as one (B, 7M+2E, E) slab ----
    BB = _batch_block(B, M, E)
    z3 = pl.pallas_call(
        _feature_kernel,
        out_shape=jax.ShapeDtypeStruct((B, R, E), jnp.float32),
        grid=(B // BB,),
        in_specs=[
            pl.BlockSpec((BB, M, E), lambda i: (i, 0, 0)),
            pl.BlockSpec((BB, M, E), lambda i: (i, 0, 0)),
            pl.BlockSpec((BB, M, E), lambda i: (i, 0, 0)),
            pl.BlockSpec((E, E), lambda i: (0, 0)),
            pl.BlockSpec((1, E), lambda i: (0, 0)),
        ],
        out_specs=pl.BlockSpec((BB, R, E), lambda i: (i, 0, 0)),
        compiler_params=pltpu.CompilerParams(
            dimension_semantics=("parallel",)),
    )(c, m, q, w, b)

    z = z3.reshape(B, S)                        # free row-major merge
    if S_pad > S:
        z = jnp.pad(z, ((0, 0), (0, S_pad - S)))    # tiny (B x S_pad) copy

    # ---- kernel 2: tiled scoring FNN ----
    n_n, n_k = S_pad // TN, S_pad // TK
    partials = pl.pallas_call(
        _fnn_kernel,
        out_shape=jax.ShapeDtypeStruct((n_n, B, 1), jnp.float32),
        grid=(n_n, n_k),
        in_specs=[
            pl.BlockSpec((B, TK), lambda n, k: (0, k)),
            pl.BlockSpec((TN, TK), lambda n, k: (n, k)),
            pl.BlockSpec((1, TN), lambda n, k: (0, n)),
            pl.BlockSpec((1, TN), lambda n, k: (0, n)),
        ],
        out_specs=pl.BlockSpec((1, B, 1), lambda n, k: (n, 0, 0)),
        scratch_shapes=[pltpu.VMEM((B, TN), jnp.float32)],
        compiler_params=pltpu.CompilerParams(
            dimension_semantics=("parallel", "arbitrary")),
    )(z, w1p, b1p, w2p)

    # Tiny (n_n, B, 1) -> (B, 1) reduction + bias + sigmoid; XLA fuses this.
    logits = jnp.sum(partials, axis=0) + b2
    return jax.nn.sigmoid(logits)


# --------------------------------------------------------------------------
# Pure-JAX reference (mirrors the PyTorch forward exactly).
# --------------------------------------------------------------------------
def reference_forward(c, m, q, params):
    w, b, w1, b1, w2, b2 = params
    wc = jnp.einsum('bme,fe->bmf', c, w) + b
    cwm = jnp.einsum('bki,bkj->bij', wc, m)
    cwq = jnp.einsum('bki,bkj->bij', wc, q)
    flat = lambda x: x.reshape(x.shape[0], -1)
    z = jnp.concatenate(
        [flat(c), flat(m), flat(q), flat(c * q), flat(c * m),
         flat(jnp.abs(c - q)), flat(jnp.abs(c - m)), flat(cwq), flat(cwm)],
        axis=1)
    h = jnp.tanh(z @ w1.T + b1)
    return jax.nn.sigmoid(h @ w2.T + b2)


def init_params(key, embedding_size, middle_number):
    E = embedding_size
    S = 7 * E * middle_number + 2 * E * E
    ks = jax.random.split(key, 6)
    u = lambda k, shp, fan_in: jax.random.uniform(
        k, shp, dtype=jnp.float32, minval=-1.0, maxval=1.0) / jnp.sqrt(fan_in)
    w = u(ks[0], (E, E), E)
    b = u(ks[1], (E,), E)
    w1 = u(ks[2], (S, S), S)
    b1 = u(ks[3], (S,), S)
    w2 = u(ks[4], (1, S), S)
    b2 = u(ks[5], (1,), S)
    return (w, b, w1, b1, w2, b2)


if __name__ == "__main__":
    B, M, E = 2, 4, 8          # batch, middle_number, embedding_size
    key = jax.random.PRNGKey(0)
    kc, km, kq, kp = jax.random.split(key, 4)
    c = jax.random.normal(kc, (B, M, E), dtype=jnp.float32)
    m = jax.random.normal(km, (B, M, E), dtype=jnp.float32)
    q = jax.random.normal(kq, (B, M, E), dtype=jnp.float32)
    params = init_params(kp, E, M)
    padded = prepare_params(params)            # one-time padding, outside jit

    fwd = jax.jit(feature_vector_forward)
    out = jax.block_until_ready(fwd(c, m, q, padded))
    ref = jax.block_until_ready(reference_forward(c, m, q, params))
    assert out.shape == (B, 1)
    assert jnp.allclose(out, ref, rtol=1e-4, atol=1e-4)
    print("KERNEL_OK")
</pallas_src>

<mosaic_0001>
module attributes {stable_mosaic.version = 11 : i64} {
  func.func @_fnn_kernel(%arg0: i32, %arg1: i32, %arg2: memref<2x384xf32, #tpu.memory_space<vmem>>, %arg3: memref<384x384xf32, #tpu.memory_space<vmem>>, %arg4: memref<1x384xf32, #tpu.memory_space<vmem>>, %arg5: memref<1x384xf32, #tpu.memory_space<vmem>>, %arg6: memref<1x2x1xf32, #tpu.memory_space<vmem>>, %arg7: memref<2x384xf32, #tpu.memory_space<vmem>>) attributes {dimension_semantics = [#tpu.dimension_semantics<parallel>, #tpu.dimension_semantics<arbitrary>], iteration_bounds = array<i64: 1, 1>, scalar_prefetch = 0 : i64, scratch_operands = 1 : i64, tpu.core_type = #tpu.core_type<tc>, window_params = [{transform_indices = @transform_0, window_bounds = array<i64: 2, 384>}, {transform_indices = @transform_1, window_bounds = array<i64: 384, 384>}, {transform_indices = @transform_2, window_bounds = array<i64: 1, 384>}, {transform_indices = @transform_3, window_bounds = array<i64: 1, 384>}, {transform_indices = @transform_4, window_bounds = array<i64: 1, 2, 1>}]} {
    %c0_i32 = arith.constant 0 : i32
    %0 = arith.cmpi eq, %arg1, %c0_i32 : i32
    %1 = arith.extui %0 : i1 to i32
    %c0_i32_0 = arith.constant 0 : i32
    %2 = arith.cmpi ne, %1, %c0_i32_0 : i32
    scf.if %2 {
      %cst_10 = arith.constant 0.000000e+00 : f32
      %12 = vector.broadcast %cst_10 : f32 to vector<2x384xf32>
      %c0_11 = arith.constant 0 : index
      %c0_12 = arith.constant 0 : index
      %13 = vector.load %arg7[%c0_11, %c0_12] : memref<2x384xf32, #tpu.memory_space<vmem>>, vector<2x384xf32>
      tpu.vector_store %arg7[%c0_11, %c0_12], %12 {strides = array<i32>} : memref<2x384xf32, #tpu.memory_space<vmem>>, vector<2x384xf32>,
    } else {
    }
    %c0 = arith.constant 0 : index
    %c0_1 = arith.constant 0 : index
    %3 = vector.load %arg7[%c0, %c0_1] : memref<2x384xf32, #tpu.memory_space<vmem>>, vector<2x384xf32>
    %c0_2 = arith.constant 0 : index
    %c0_3 = arith.constant 0 : index
    %4 = vector.load %arg2[%c0_2, %c0_3] : memref<2x384xf32, #tpu.memory_space<vmem>>, vector<2x384xf32>
    %c0_4 = arith.constant 0 : index
    %c0_5 = arith.constant 0 : index
    %5 = vector.load %arg3[%c0_4, %c0_5] : memref<384x384xf32, #tpu.memory_space<vmem>>, vector<384x384xf32>
    %cst = arith.constant dense<0.000000e+00> : vector<2x384xf32>
    %6 = tpu.matmul %4, %5, %cst {dimension_numbers = #tpu.dot_dimension_numbers<[1], [1], [0], [0], [0, 0, 1, 0], [], []>} : vector<2x384xf32>, vector<384x384xf32>, vector<2x384xf32> -> vector<2x384xf32>
    %7 = arith.addf %3, %6 : vector<2x384xf32>
    %c0_6 = arith.constant 0 : index
    %c0_7 = arith.constant 0 : index
    %8 = vector.load %arg7[%c0_6, %c0_7] : memref<2x384xf32, #tpu.memory_space<vmem>>, vector<2x384xf32>
    tpu.vector_store %arg7[%c0_6, %c0_7], %7 {strides = array<i32>} : memref<2x384xf32, #tpu.memory_space<vmem>>, vector<2x384xf32>,
    %c0_i32_8 = arith.constant 0 : i32
    %9 = arith.cmpi eq, %arg1, %c0_i32_8 : i32
    %10 = arith.extui %9 : i1 to i32
    %c0_i32_9 = arith.constant 0 : i32
    %11 = arith.cmpi ne, %10, %c0_i32_9 : i32
    scf.if %11 {
      %c0_10 = arith.constant 0 : index
      %c0_11 = arith.constant 0 : index
      %12 = vector.load %arg7[%c0_10, %c0_11] : memref<2x384xf32, #tpu.memory_space<vmem>>, vector<2x384xf32>
      %c0_12 = arith.constant 0 : index
      %c0_13 = arith.constant 0 : index
      %13 = vector.load %arg4[%c0_12, %c0_13] : memref<1x384xf32, #tpu.memory_space<vmem>>, vector<1x384xf32>
      %14 = vector.broadcast %13 : vector<1x384xf32> to vector<2x384xf32>
      %15 = arith.addf %12, %14 : vector<2x384xf32>
      %16 = math.tanh %15 : vector<2x384xf32>
      %c0_14 = arith.constant 0 : index
      %c0_15 = arith.constant 0 : index
      %17 = vector.load %arg5[%c0_14, %c0_15] : memref<1x384xf32, #tpu.memory_space<vmem>>, vector<1x384xf32>
      %cst_16 = arith.constant dense<0.000000e+00> : vector<2x1xf32>
      %18 = tpu.matmul %16, %17, %cst_16 {dimension_numbers = #tpu.dot_dimension_numbers<[1], [1], [0], [0], [0, 0, 1, 0], [], []>} : vector<2x384xf32>, vector<1x384xf32>, vector<2x1xf32> -> vector<2x1xf32>
      %c0_17 = arith.constant 0 : index
      %c0_18 = arith.constant 0 : index
      %c0_19 = arith.constant 0 : index
      %19 = vector.load %arg6[%c0_17, %c0_18, %c0_19] : memref<1x2x1xf32, #tpu.memory_space<vmem>>, vector<1x2x1xf32>
      %20 = vector.shape_cast %19 : vector<1x2x1xf32> to vector<2x1xf32>
      %21 = vector.shape_cast %18 : vector<2x1xf32> to vector<1x2x1xf32>
      tpu.vector_store %arg6[%c0_17, %c0_18, %c0_19], %21 {strides = array<i32>} : memref<1x2x1xf32, #tpu.memory_space<vmem>>, vector<1x2x1xf32>,
    } else {
    }
    return
  }
  func.func @transform_0(%arg0: i32, %arg1: i32) -> (i32, i32) {
    %c0_i32 = arith.constant 0 : i32
    %c0_i32_0 = arith.constant 0 : i32
    return %c0_i32, %arg1 : i32, i32
  }
  func.func @transform_1(%arg0: i32, %arg1: i32) -> (i32, i32) {
    %c0_i32 = arith.constant 0 : i32
    return %arg0, %arg1 : i32, i32
  }
  func.func @transform_2(%arg0: i32, %arg1: i32) -> (i32, i32) {
    %c0_i32 = arith.constant 0 : i32
    %c0_i32_0 = arith.constant 0 : i32
    return %c0_i32, %arg0 : i32, i32
  }
  func.func @transform_3(%arg0: i32, %arg1: i32) -> (i32, i32) {
    %c0_i32 = arith.constant 0 : i32
    %c0_i32_0 = arith.constant 0 : i32
    return %c0_i32, %arg0 : i32, i32
  }
  func.func @transform_4(%arg0: i32, %arg1: i32) -> (i32, i32, i32) {
    %c0_i32 = arith.constant 0 : i32
    %c0_i32_0 = arith.constant 0 : i32
    %c0_i32_1 = arith.constant 0 : i32
    return %arg0, %c0_i32, %c0_i32_0 : i32, i32, i32
  }
}

module attributes {stable_mosaic.version = 11 : i64} {
  func.func @_feature_kernel(%arg0: i32, %arg1: memref<2x4x8xf32, #tpu.memory_space<vmem>>, %arg2: memref<2x4x8xf32, #tpu.memory_space<vmem>>, %arg3: memref<2x4x8xf32, #tpu.memory_space<vmem>>, %arg4: memref<8x8xf32, #tpu.memory_space<vmem>>, %arg5: memref<1x8xf32, #tpu.memory_space<vmem>>, %arg6: memref<2x44x8xf32, #tpu.memory_space<vmem>>) attributes {dimension_semantics = [#tpu.dimension_semantics<parallel>], iteration_bounds = array<i64: 1>, scalar_prefetch = 0 : i64, scratch_operands = 0 : i64, tpu.core_type = #tpu.core_type<tc>, window_params = [{transform_indices = @transform_0, window_bounds = array<i64: 2, 4, 8>}, {transform_indices = @transform_1, window_bounds = array<i64: 2, 4, 8>}, {transform_indices = @transform_2, window_bounds = array<i64: 2, 4, 8>}, {pipeline_mode = #tpu.pipeline_mode<synchronous>, transform_indices = @transform_3, window_bounds = array<i64: 8, 8>}, {pipeline_mode = #tpu.pipeline_mode<synchronous>, transform_indices = @transform_4, window_bounds = array<i64: 1, 8>}, {transform_indices = @transform_5, window_bounds = array<i64: 2, 44, 8>}]} {
    %c0 = arith.constant 0 : index
    %c0_0 = arith.constant 0 : index
    %c0_1 = arith.constant 0 : index
    %0 = vector.load %arg1[%c0, %c0_0, %c0_1] : memref<2x4x8xf32, #tpu.memory_space<vmem>>, vector<2x4x8xf32>
    %c0_2 = arith.constant 0 : index
    %c0_3 = arith.constant 0 : index
    %c0_4 = arith.constant 0 : index
    %1 = vector.load %arg2[%c0_2, %c0_3, %c0_4] : memref<2x4x8xf32, #tpu.memory_space<vmem>>, vector<2x4x8xf32>
    %c0_5 = arith.constant 0 : index
    %c0_6 = arith.constant 0 : index
    %c0_7 = arith.constant 0 : index
    %2 = vector.load %arg3[%c0_5, %c0_6, %c0_7] : memref<2x4x8xf32, #tpu.memory_space<vmem>>, vector<2x4x8xf32>
    %c0_8 = arith.constant 0 : index
    %c0_9 = arith.constant 0 : index
    %c0_10 = arith.constant 0 : index
    %3 = vector.load %arg6[%c0_8, %c0_9, %c0_10] : memref<2x44x8xf32, #tpu.memory_space<vmem>>, vector<2x4x8xf32>
    tpu.vector_store %arg6[%c0_8, %c0_9, %c0_10], %0 {strides = array<i32>} : memref<2x44x8xf32, #tpu.memory_space<vmem>>, vector<2x4x8xf32>,
    %c0_11 = arith.constant 0 : index
    %c4 = arith.constant 4 : index
    %c0_12 = arith.constant 0 : index
    %4 = vector.load %arg6[%c0_11, %c4, %c0_12] : memref<2x44x8xf32, #tpu.memory_space<vmem>>, vector<2x4x8xf32>
    tpu.vector_store %arg6[%c0_11, %c4, %c0_12], %1 {strides = array<i32>} : memref<2x44x8xf32, #tpu.memory_space<vmem>>, vector<2x4x8xf32>,
    %c0_13 = arith.constant 0 : index
    %c8 = arith.constant 8 : index
    %c0_14 = arith.constant 0 : index
    %5 = vector.load %arg6[%c0_13, %c8, %c0_14] : memref<2x44x8xf32, #tpu.memory_space<vmem>>, vector<2x4x8xf32>
    tpu.vector_store %arg6[%c0_13, %c8, %c0_14], %2 {strides = array<i32>} : memref<2x44x8xf32, #tpu.memory_space<vmem>>, vector<2x4x8xf32>,
    %6 = arith.mulf %0, %2 : vector<2x4x8xf32>
    %c0_15 = arith.constant 0 : index
    %c12 = arith.constant 12 : index
    %c0_16 = arith.constant 0 : index
    %7 = vector.load %arg6[%c0_15, %c12, %c0_16] : memref<2x44x8xf32, #tpu.memory_space<vmem>>, vector<2x4x8xf32>
    tpu.vector_store %arg6[%c0_15, %c12, %c0_16], %6 {strides = array<i32>} : memref<2x44x8xf32, #tpu.memory_space<vmem>>, vector<2x4x8xf32>,
    %8 = arith.mulf %0, %1 : vector<2x4x8xf32>
    %c0_17 = arith.constant 0 : index
    %c16 = arith.constant 16 : index
    %c0_18 = arith.constant 0 : index
    %9 = vector.load %arg6[%c0_17, %c16, %c0_18] : memref<2x44x8xf32, #tpu.memory_space<vmem>>, vector<2x4x8xf32>
    tpu.vector_store %arg6[%c0_17, %c16, %c0_18], %8 {strides = array<i32>} : memref<2x44x8xf32, #tpu.memory_space<vmem>>, vector<2x4x8xf32>,
    %10 = arith.subf %0, %2 : vector<2x4x8xf32>
    %11 = math.absf %10 : vector<2x4x8xf32>
    %c0_19 = arith.constant 0 : index
    %c20 = arith.constant 20 : index
    %c0_20 = arith.constant 0 : index
    %12 = vector.load %arg6[%c0_19, %c20, %c0_20] : memref<2x44x8xf32, #tpu.memory_space<vmem>>, vector<2x4x8xf32>
    tpu.vector_store %arg6[%c0_19, %c20, %c0_20], %11 {strides = array<i32>} : memref<2x44x8xf32, #tpu.memory_space<vmem>>, vector<2x4x8xf32>,
    %13 = arith.subf %0, %1 : vector<2x4x8xf32>
    %14 = math.absf %13 : vector<2x4x8xf32>
    %c0_21 = arith.constant 0 : index
    %c24 = arith.constant 24 : index
    %c0_22 = arith.constant 0 : index
    %15 = vector.load %arg6[%c0_21, %c24, %c0_22] : memref<2x44x8xf32, #tpu.memory_space<vmem>>, vector<2x4x8xf32>
    tpu.vector_store %arg6[%c0_21, %c24, %c0_22], %14 {strides = array<i32>} : memref<2x44x8xf32, #tpu.memory_space<vmem>>, vector<2x4x8xf32>,
    %c0_23 = arith.constant 0 : index
    %c0_24 = arith.constant 0 : index
    %16 = vector.load %arg4[%c0_23, %c0_24] : memref<8x8xf32, #tpu.memory_space<vmem>>, vector<8x8xf32>
    %c0_25 = arith.constant 0 : index
    %c0_26 = arith.constant 0 : index
    %17 = vector.load %arg5[%c0_25, %c0_26] : memref<1x8xf32, #tpu.memory_space<vmem>>, vector<1x8xf32>
    %18 = vector.shape_cast %0 : vector<2x4x8xf32> to vector<8x8xf32>
    %cst = arith.constant dense<0.000000e+00> : vector<8x8xf32>
    %19 = tpu.matmul %18, %16, %cst {dimension_numbers = #tpu.dot_dimension_numbers<[1], [1], [0], [0], [0, 0, 1, 0], [], []>} : vector<8x8xf32>, vector<8x8xf32>, vector<8x8xf32> -> vector<8x8xf32>
    %20 = vector.broadcast %17 : vector<1x8xf32> to vector<8x8xf32>
    %21 = arith.addf %19, %20 : vector<8x8xf32>
    %22 = vector.extract_strided_slice %21 {offsets = [0, 0], sizes = [4, 8], strides = [1, 1]} : vector<8x8xf32> to vector<4x8xf32>
    %23 = vector.extract_strided_slice %2 {offsets = [0, 0, 0], sizes = [1, 4, 8], strides = [1, 1, 1]} : vector<2x4x8xf32> to vector<1x4x8xf32>
    %24 = vector.shape_cast %23 : vector<1x4x8xf32> to vector<4x8xf32>
    %cst_27 = arith.constant dense<0.000000e+00> : vector<8x8xf32>
    %25 = tpu.matmul %22, %24, %cst_27 {dimension_numbers = #tpu.dot_dimension_numbers<[0], [0], [1], [1], [0, 1, 1, 1], [], []>} : vector<4x8xf32>, vector<4x8xf32>, vector<8x8xf32> -> vector<8x8xf32>
    %26 = vector.extract_strided_slice %1 {offsets = [0, 0, 0], sizes = [1, 4, 8], strides = [1, 1, 1]} : vector<2x4x8xf32> to vector<1x4x8xf32>
    %27 = vector.shape_cast %26 : vector<1x4x8xf32> to vector<4x8xf32>
    %cst_28 = arith.constant dense<0.000000e+00> : vector<8x8xf32>
    %28 = tpu.matmul %22, %27, %cst_28 {dimension_numbers = #tpu.dot_dimension_numbers<[0], [0], [1], [1], [0, 1, 1, 1], [], []>} : vector<4x8xf32>, vector<4x8xf32>, vector<8x8xf32> -> vector<8x8xf32>
    %29 = vector.shape_cast %25 : vector<8x8xf32> to vector<1x8x8xf32>
    %c0_29 = arith.constant 0 : index
    %c28 = arith.constant 28 : index
    %c0_30 = arith.constant 0 : index
    %30 = vector.load %arg6[%c0_29, %c28, %c0_30] : memref<2x44x8xf32, #tpu.memory_space<vmem>>, vector<1x8x8xf32>
    tpu.vector_store %arg6[%c0_29, %c28, %c0_30], %29 {strides = array<i32>} : memref<2x44x8xf32, #tpu.memory_space<vmem>>, vector<1x8x8xf32>,
    %31 = vector.shape_cast %28 : vector<8x8xf32> to vector<1x8x8xf32>
    %c0_31 = arith.constant 0 : index
    %c36 = arith.constant 36 : index
    %c0_32 = arith.constant 0 : index
    %32 = vector.load %arg6[%c0_31, %c36, %c0_32] : memref<2x44x8xf32, #tpu.memory_space<vmem>>, vector<1x8x8xf32>
    tpu.vector_store %arg6[%c0_31, %c36, %c0_32], %31 {strides = array<i32>} : memref<2x44x8xf32, #tpu.memory_space<vmem>>, vector<1x8x8xf32>,
    %33 = vector.extract_strided_slice %21 {offsets = [4, 0], sizes = [4, 8], strides = [1, 1]} : vector<8x8xf32> to vector<4x8xf32>
    %34 = vector.extract_strided_slice %2 {offsets = [1, 0, 0], sizes = [1, 4, 8], strides = [1, 1, 1]} : vector<2x4x8xf32> to vector<1x4x8xf32>
    %35 = vector.shape_cast %34 : vector<1x4x8xf32> to vector<4x8xf32>
    %cst_33 = arith.constant dense<0.000000e+00> : vector<8x8xf32>
    %36 = tpu.matmul %33, %35, %cst_33 {dimension_numbers = #tpu.dot_dimension_numbers<[0], [0], [1], [1], [0, 1, 1, 1], [], []>} : vector<4x8xf32>, vector<4x8xf32>, vector<8x8xf32> -> vector<8x8xf32>
    %37 = vector.extract_strided_slice %1 {offsets = [1, 0, 0], sizes = [1, 4, 8], strides = [1, 1, 1]} : vector<2x4x8xf32> to vector<1x4x8xf32>
    %38 = vector.shape_cast %37 : vector<1x4x8xf32> to vector<4x8xf32>
    %cst_34 = arith.constant dense<0.000000e+00> : vector<8x8xf32>
    %39 = tpu.matmul %33, %38, %cst_34 {dimension_numbers = #tpu.dot_dimension_numbers<[0], [0], [1], [1], [0, 1, 1, 1], [], []>} : vector<4x8xf32>, vector<4x8xf32>, vector<8x8xf32> -> vector<8x8xf32>
    %40 = vector.shape_cast %36 : vector<8x8xf32> to vector<1x8x8xf32>
    %c1 = arith.constant 1 : index
    %c28_35 = arith.constant 28 : index
    %c0_36 = arith.constant 0 : index
    %41 = vector.load %arg6[%c1, %c28_35, %c0_36] : memref<2x44x8xf32, #tpu.memory_space<vmem>>, vector<1x8x8xf32>
    tpu.vector_store %arg6[%c1, %c28_35, %c0_36], %40 {strides = array<i32>} : memref<2x44x8xf32, #tpu.memory_space<vmem>>, vector<1x8x8xf32>,
    %42 = vector.shape_cast %39 : vector<8x8xf32> to vector<1x8x8xf32>
    %c1_37 = arith.constant 1 : index
    %c36_38 = arith.constant 36 : index
    %c0_39 = arith.constant 0 : index
    %43 = vector.load %arg6[%c1_37, %c36_38, %c0_39] : memref<2x44x8xf32, #tpu.memory_space<vmem>>, vector<1x8x8xf32>
    tpu.vector_store %arg6[%c1_37, %c36_38, %c0_39], %42 {strides = array<i32>} : memref<2x44x8xf32, #tpu.memory_space<vmem>>, vector<1x8x8xf32>,
    return
  }
  func.func @transform_0(%arg0: i32) -> (i32, i32, i32) {
    %c0_i32 = arith.constant 0 : i32
    %c0_i32_0 = arith.constant 0 : i32
    %c0_i32_1 = arith.constant 0 : i32
    return %arg0, %c0_i32, %c0_i32_0 : i32, i32, i32
  }
  func.func @transform_1(%arg0: i32) -> (i32, i32, i32) {
    %c0_i32 = arith.constant 0 : i32
    %c0_i32_0 = arith.constant 0 : i32
    %c0_i32_1 = arith.constant 0 : i32
    return %arg0, %c0_i32, %c0_i32_0 : i32, i32, i32
  }
  func.func @transform_2(%arg0: i32) -> (i32, i32, i32) {
    %c0_i32 = arith.constant 0 : i32
    %c0_i32_0 = arith.constant 0 : i32
    %c0_i32_1 = arith.constant 0 : i32
    return %arg0, %c0_i32, %c0_i32_0 : i32, i32, i32
  }
  func.func @transform_3(%arg0: i32) -> (i32, i32) {
    %c0_i32 = arith.constant 0 : i32
    %c0_i32_0 = arith.constant 0 : i32
    %c0_i32_1 = arith.constant 0 : i32
    return %c0_i32, %c0_i32_0 : i32, i32
  }
  func.func @transform_4(%arg0: i32) -> (i32, i32) {
    %c0_i32 = arith.constant 0 : i32
    %c0_i32_0 = arith.constant 0 : i32
    %c0_i32_1 = arith.constant 0 : i32
    return %c0_i32, %c0_i32_0 : i32, i32
  }
  func.func @transform_5(%arg0: i32) -> (i32, i32, i32) {
    %c0_i32 = arith.constant 0 : i32
    %c0_i32_0 = arith.constant 0 : i32
    %c0_i32_1 = arith.constant 0 : i32
    return %arg0, %c0_i32, %c0_i32_0 : i32, i32, i32
  }
}

</mosaic_0001>

<bundles_post_ra>
// kernel: feature_vector_forward.2
= control target key start
LH: loop header
LB: loop body
LE: loop exit
PB: predicated region body
PF: predicated region fallthrough
CT: control target
= control target key end

     0   :  { %10 = vsyncpa [#allocation3], 0  ;;  %s581_s0 = inlined_call_operand.hbm [shape: f32[2,4,8], index: 0, kind: input, shape index: {}]   ;;  %s582_s1 = inlined_call_operand.hbm [shape: f32[2,4,8], index: 1, kind: input, shape index: {}]   ;;  %s583_s2 = inlined_call_operand.hbm [shape: f32[2,4,8], index: 2, kind: input, shape index: {}]   ;;  %s584_s3 = inlined_call_operand.hbm [shape: f32[8,8], index: 3, kind: input, shape index: {}]   ;;  %s585_s4 = inlined_call_operand.vmem [shape: f32[1,8], index: 4, kind: input, shape index: {}]   ;;  %s586_s5 = inlined_call_operand.vmem [shape: f32[2,44,8], index: 5, kind: output, shape index: {}]  }
   0x1   :  { %11 = vsyncpa [#allocation5], 0 }
   0x2   :  { %12 = vsyncpa [#allocation8], 0  ;;  %s30_s20 = sshll.u32 %s582_s1, 4  ;;  %s452_s21 = smov [#allocation4]   ;;  %s31_s20 = int_to_ptr.hbm [resolvable:$true] %s30_s20 }
   0x3   :  { %s32_s22 = sshll.u32 %s452_s21, 4  ;;  %s17_s25 = sshll.u32 %s581_s0, 4  ;;  %s33_s22 = int_to_ptr.vmem [resolvable:$true] %s32_s22  ;;  %s18_s25 = int_to_ptr.hbm [resolvable:$true] %s17_s25 }
   0x4   :  { %s453_s26 = smov 64   ;;  %s454_s27 = smov 4  }
   0x5   :  { %38 = dma.hbm_to_vmem [thread:$0]  %s31_s20, 128, %s33_s22, [#allocation5], %s453_s26, %s453_s26, %s454_s27  }
   0x6   :  { %s455_s28 = smov [#allocation2]   ;;  %s43_s7 = sshll.u32 %s583_s2, 4  ;;  %s44_s7 = int_to_ptr.hbm [resolvable:$true] %s43_s7 }
   0x7   :  { %s19_s29 = sshll.u32 %s455_s28, 4  ;;  %s57_s9 = sshll.u32 %s584_s3, 4  ;;  %s20_s29 = int_to_ptr.vmem [resolvable:$true] %s19_s29  ;;  %s58_s9 = int_to_ptr.hbm [resolvable:$true] %s57_s9 }
   0x8   :  { %25 = dma.hbm_to_vmem [thread:$0]  %s18_s25, 128, %s20_s29, [#allocation3], %s453_s26, %s453_s26, %s454_s27  }
   0x9   :  { %s456_s10 = smov [#allocation6]   ;;  %s457_s0 = smov [#allocation7]  }
   0xa   :  { %s45_s11 = sshll.u32 %s456_s10, 4  ;;  %s59_s12 = sshll.u32 %s457_s0, 4  ;;  %s46_s11 = int_to_ptr.vmem [resolvable:$true] %s45_s11  ;;  %s60_s12 = int_to_ptr.vmem [resolvable:$true] %s59_s12 }
   0xb   :  { %51 = dma.hbm_to_vmem [thread:$0]  %s44_s7, 128, %s46_s11, [#allocation5], %s453_s26, %s453_s26, %s454_s27  }
   0xc   :  { %62 = dma.hbm_to_vmem [thread:$0]  %s58_s9, 128, %s60_s12, [#allocation8]  }
   0xd   :  { %446 = dma.done.wait [#allocation3], 128  }
   0xe   :  { %447 = vsyncadd [#allocation3], 4294967168 }
   0xf   :  { %448 = dma.done.wait [#allocation5], 256  }
  0x10   :  { %449 = vsyncadd [#allocation5], 4294967040 }
  0x11   :  { %450 = dma.done.wait [#allocation8], 128  }
  0x12   :  { %451 = vsyncadd [#allocation8], 4294967168  ;;  %vm125_vm0 = vcmask 64512   ;;  %vm87_vm1 = vcmask 60416   ;;  %v114_v0 = vld [vmem:[#allocation7] sm:$0xff]  ;;  %vm187_vm2 = vcmask 1043456  }
  0x13   :  { %v81_v1 = vld [vmem:[#allocation2] sm:$0xf]  ;;  %330 = vmatpush.xpose.msk.msra.mxu0 %vm125_vm0, %v114_v0  ;;  %v82_v2 = vld [vmem:[#allocation2 + $0x4] sm:$0xf]  ;;  %v85_v4 = vld [vmem:[#allocation6] sm:$0xf] }
  0x14   :  { %88 = vst.msk [vmem:[%s586_s5] sm:$0xf] %vm87_vm1, %v81_v1  ;;  %v83_v5 = vld [vmem:[#allocation4] sm:$0xf]  ;;  %v94_v6 = vmul.f32 %v85_v4, %v81_v1  ;;  %v102_v7 = vsub.f32 %v81_v1, %v85_v4  ;;  %332 = vmatpush.msk.msra.mxu1 %vm187_vm2, %v85_v4  ;;  %v349_v12 = vld [vmem:[%s585_s4] ss:$0 sm:$0xff] }
  0x15   :  { %89 = vst.msk [vmem:[%s586_s5 + $0x30] sm:$0xf] %vm87_vm1, %v82_v2  ;;  %v98_v8 = vmul.f32 %v83_v5, %v81_v1  ;;  %334 = vmatpush.msk.msra.mxu2 %vm187_vm2, %v83_v5  ;;  %v108_v9 = vsub.f32 %v81_v1, %v83_v5  ;;  %v84_v16 = vld [vmem:[#allocation4 + $0x4] sm:$0xf]  ;;  %v86_v17 = vld [vmem:[#allocation6 + $0x4] sm:$0xf] }
  0x16   :  { %121 = vst [vmem:[#allocation1] ss:$2 sm:$0xff] %v81_v1  ;;  %v104_v10 = vand.u32 2147483647, %v102_v7  ;;  %v99_v18 = vmul.f32 %v84_v16, %v82_v2  ;;  %v109_v19 = vsub.f32 %v82_v2, %v84_v16  ;;  %338 = vmatpush.msk.msrb.mxu1 %vm187_vm2, %v84_v16  ;;  %v95_v20 = vmul.f32 %v86_v17, %v82_v2 }
  0x17   :  { %123 = vst [vmem:[#allocation1 + $0x1] ss:$2 sm:$0xff] %v82_v2  ;;  %v110_v11 = vand.u32 2147483647, %v108_v9  ;;  %336 = vmatpush.msk.msra.mxu3 %vm187_vm2, %v86_v17  ;;  %v103_v21 = vsub.f32 %v82_v2, %v86_v17  ;;  %vm183_vm3 = vcmask 31744  }
  0x18   :  { %92 = vst.msk [vmem:[%s586_s5 + $0x8] sm:$0xf] %vm87_vm1, %v85_v4  ;;  %v111_v22 = vand.u32 2147483647, %v109_v19 }
  0x19   :  { %90 = vst.msk [vmem:[%s586_s5 + $0x4] sm:$0xf] %vm87_vm1, %v83_v5  ;;  %v105_v23 = vand.u32 2147483647, %v103_v21 }
  0x1a   :  { %96 = vst.msk [vmem:[%s586_s5 + $0xc] sm:$0xf] %vm87_vm1, %v94_v6 }
  0x1b   :  { %100 = vst.msk [vmem:[%s586_s5 + $0x10] sm:$0xf] %vm87_vm1, %v98_v8 }
  0x1c   :  { %106 = vst.msk [vmem:[%s586_s5 + $0x14] sm:$0xf] %vm87_vm1, %v104_v10 }
  0x1d   :  { %112 = vst.msk [vmem:[%s586_s5 + $0x18] sm:$0xf] %vm87_vm1, %v110_v11 }
  0x1e   :  { %v124_v3 = vld.sshfl [vmem:[#allocation1] sm:$0xff pattern:$0x75316420]  ;;  %91 = vst.msk [vmem:[%s586_s5 + $0x34] sm:$0xf] %vm87_vm1, %v84_v16 }
  0x1f   :  { %331 = vmatmul.msk.f32.vlgmr.msra.gmra.mxu0 %vm125_vm0, %v124_v3  ;;  %93 = vst.msk [vmem:[%s586_s5 + $0x38] sm:$0xf] %vm87_vm1, %v86_v17 }
  0x20   :  { %101 = vst.msk [vmem:[%s586_s5 + $0x40] sm:$0xf] %vm87_vm1, %v99_v18 }
  0x21   :  { %97 = vst.msk [vmem:[%s586_s5 + $0x3c] sm:$0xf] %vm87_vm1, %v95_v20 }
  0x22   :  { %113 = vst.msk [vmem:[%s586_s5 + $0x48] sm:$0xf] %vm87_vm1, %v111_v22 }
  0x23   :  { %107 = vst.msk [vmem:[%s586_s5 + $0x44] sm:$0xf] %vm87_vm1, %v105_v23 }
  0x9c   :  { %v148_v13 = vpop.f32.mrf.mxu0 }
  0x9d   :  { %v149_v14 = vadd.f32 %v349_v12, %v148_v13 }
  0x9f   :  { %151 = vxpose.xlu0.b32.start.end [1/1] (short) (narrow) %v149_v14, 8  ;;  %v237_v15 = vrot.slane %v149_v14, 4 }
  0xa7   :  { %239 = vxpose.xlu0.b32.start.end [1/1] (short) (narrow) %v237_v15, 8 }
 0x143   :  { %v167_v24 = vpop.trf.xlu0 }
 0x144   :  { %333 = vmatmul.msk.f32.vlgmr.msra.gmra.mxu1 %vm183_vm3, %v167_v24  ;;  %335 = vmatmul.msk.f32.vlgmr.msra.gmra.mxu2 %vm183_vm3, %v167_v24 }
 0x14b   :  { %v255_v25 = vpop.trf.xlu0 }
 0x14c   :  { %337 = vmatmul.msk.f32.vlgmr.msra.gmra.mxu3 %vm183_vm3, %v255_v25  ;;  %339 = vmatmul.msk.f32.vlgmr.msrb.gmra.mxu1 %vm183_vm3, %v255_v25 }
 0x1c1   :  { %v208_v26 = vpop.f32.mrf.mxu1 }
 0x1c2   :  { %234 = vst.msk [vmem:[%s586_s5 + $0x1c] sm:$0xff] %vm125_vm0, %v208_v26 }
 0x1c7   :  { %v231_v27 = vpop.f32.mrf.mxu2 }
 0x1c8   :  { %235 = vst.msk [vmem:[%s586_s5 + $0x24] sm:$0xff] %vm125_vm0, %v231_v27 }
 0x1c9   :  { %v317_v28 = vpop.f32.mrf.mxu1 }
 0x1ca   :  { %341 = vst.msk [vmem:[%s586_s5 + $0x54] sm:$0xff] %vm125_vm0, %v317_v28 }
 0x1cf   :  { %v294_v29 = vpop.f32.mrf.mxu3 }
 0x1d0   :  { %340 = vst.msk [vmem:[%s586_s5 + $0x4c] sm:$0xff] %vm125_vm0, %v294_v29 }
 0x1d1   :  { %327 = vsyncpa [#allocation3], 1 }
 0x1d2   :  { %328 = vsyncpa [#allocation5], 1 }
 0x1d3   :  { %329 = vsyncpa [#allocation8], 1 }

// kernel: feature_vector_forward.3
= control target key start
LH: loop header
LB: loop body
LE: loop exit
PB: predicated region body
PF: predicated region fallthrough
CT: control target
= control target key end

     0   :  { %9 = vsyncpa [#allocation4], 0  ;;  %s465_s18 = smov [#allocation3]   ;;  %s466_s20 = smov 384   ;;  %s533_s0 = inlined_call_operand.vmem [shape: f32[2,384], index: 0, kind: input, shape index: {}]   ;;  %s534_s1 = inlined_call_operand.hbm [shape: f32[384,384], index: 1, kind: input, shape index: {}]   ;;  %s535_s2 = inlined_call_operand.vmem [shape: f32[1,384], index: 2, kind: input, shape index: {}]   ;;  %s536_s3 = inlined_call_operand.vmem [shape: f32[1,384], index: 3, kind: input, shape index: {}]   ;;  %s537_s4 = inlined_call_operand.vmem [shape: f32[1,2,1], index: 4, kind: output, shape index: {}]  }
   0x1   :  { %s16_s17 = sshll.u32 %s534_s1, 4  ;;  %s18_s19 = sshll.u32 %s465_s18, 4  ;;  %s17_s17 = int_to_ptr.hbm [resolvable:$true] %s16_s17  ;;  %s19_s19 = int_to_ptr.vmem [resolvable:$true] %s18_s19 }
   0x2   :  { %s467_s21 = smov 24  }
   0x3   :  { %24 = dma.hbm_to_vmem [thread:$0]  %s17_s17, 18432, %s19_s19, [#allocation4], %s466_s20, %s466_s20, %s467_s21  }
   0x4   :  { %463 = dma.done.wait [#allocation4], 18432  }
   0x5   :  { %464 = vsyncadd [#allocation4], 4294948864  ;;  %v85_v0 = vld [vmem:[#allocation3 + $0x168] sm:$0xff]  ;;  %v86_v1 = vld [vmem:[#allocation3 + $0x170] sm:$0xff]  ;;  %vm377_vm0 = vcmask 1041408   ;;  %vm379_vm1 = vcmask 1043456  }
   0x6   :  { %192 = vmatpush.xpose.msra.mxu0 %v85_v0  ;;  %212 = vmatpush.xpose.msra.mxu1 %v86_v1  ;;  %v82_v2 = vld [vmem:[#allocation3 + $0x150] sm:$0xff]  ;;  %v83_v3 = vld [vmem:[#allocation3 + $0x158] sm:$0xff]  ;;  %v80_v5 = vld [vmem:[#allocation3 + $0x140] sm:$0xff]  ;;  %vm426_vm2 = vcmask 1024  }
   0x7   :  { %v79_v4 = vld [vmem:[#allocation3 + $0x138] sm:$0xff]  ;;  %v76_v6 = vld [vmem:[#allocation3 + $0x120] sm:$0xff]  ;;  %v77_v7 = vld [vmem:[#allocation3 + $0x128] sm:$0xff] }
   0x8   :  { %v73_v8 = vld [vmem:[#allocation3 + $0x108] sm:$0xff]  ;;  %v74_v9 = vld [vmem:[#allocation3 + $0x110] sm:$0xff]  ;;  %v71_v11 = vld [vmem:[#allocation3 + $0xf8] sm:$0xff] }
   0x9   :  { %v70_v10 = vld [vmem:[#allocation3 + $0xf0] sm:$0xff]  ;;  %v87_v12 = vld [vmem:[#allocation3 + $0x178] sm:$0xff]  ;;  %v133_v13 = vld [vmem:[#allocation3 + $0x2e8] sm:$0xff] }
   0xa   :  { %193 = vmatpush.xpose.msra.mxu0 %v82_v2  ;;  %213 = vmatpush.xpose.msra.mxu1 %v83_v3  ;;  %v67_v14 = vld [vmem:[#allocation3 + $0xd8] sm:$0xff]  ;;  %v68_v15 = vld [vmem:[#allocation3 + $0xe0] sm:$0xff]  ;;  %v130_v17 = vld [vmem:[#allocation3 + $0x2d0] sm:$0xff] }
   0xb   :  { %232 = vmatpush.xpose.msra.mxu2 %v87_v12  ;;  %252 = vmatpush.xpose.msra.mxu3 %v133_v13  ;;  %v84_v16 = vld [vmem:[#allocation3 + $0x160] sm:$0xff]  ;;  %v65_v19 = vld [vmem:[#allocation3 + $0xc8] sm:$0xff]  ;;  %v127_v21 = vld [vmem:[#allocation3 + $0x2b8] sm:$0xff] }
   0xc   :  { %v64_v18 = vld [vmem:[#allocation3 + $0xc0] sm:$0xff]  ;;  %v81_v20 = vld [vmem:[#allocation3 + $0x148] sm:$0xff]  ;;  %v62_v23 = vld [vmem:[#allocation3 + $0xb0] sm:$0xff] }
   0xd   :  { %v61_v22 = vld [vmem:[#allocation3 + $0xa8] sm:$0xff]  ;;  %v78_v24 = vld [vmem:[#allocation3 + $0x130] sm:$0xff]  ;;  %v124_v25 = vld [vmem:[#allocation3 + $0x2a0] sm:$0xff] }
   0xe   :  { %194 = vmatpush.xpose.msra.mxu0 %v79_v4  ;;  %214 = vmatpush.xpose.msra.mxu1 %v80_v5  ;;  %v58_v26 = vld [vmem:[#allocation3 + $0x90] sm:$0xff]  ;;  %v59_v27 = vld [vmem:[#allocation3 + $0x98] sm:$0xff]  ;;  %v121_v29 = vld [vmem:[#allocation3 + $0x288] sm:$0xff] }
   0xf   :  { %233 = vmatpush.xpose.msra.mxu2 %v84_v16  ;;  %253 = vmatpush.xpose.msra.mxu3 %v130_v17  ;;  %v75_v28 = vld [vmem:[#allocation3 + $0x118] sm:$0xff]  ;;  %v56_v31 = vld [vmem:[#allocation3 + $0x80] sm:$0xff]  ;;  %v118_v33 = vld [vmem:[#allocation3 + $0x270] sm:$0xff] }
  0x10   :  { %v55_v30 = vld [vmem:[#allocation3 + $0x78] sm:$0xff]  ;;  %v72_v32 = vld [vmem:[#allocation3 + $0x100] sm:$0xff]  ;;  %v53_v35 = vld [vmem:[#allocation3 + $0x68] sm:$0xff] }
  0x11   :  { %v52_v34 = vld [vmem:[#allocation3 + $0x60] sm:$0xff]  ;;  %v69_v36 = vld [vmem:[#allocation3 + $0xe8] sm:$0xff]  ;;  %v115_v37 = vld [vmem:[#allocation3 + $0x258] sm:$0xff] }
  0x12   :  { %195 = vmatpush.xpose.msra.mxu0 %v76_v6  ;;  %215 = vmatpush.xpose.msra.mxu1 %v77_v7  ;;  %v49_v38 = vld [vmem:[#allocation3 + $0x48] sm:$0xff]  ;;  %v50_v39 = vld [vmem:[#allocation3 + $0x50] sm:$0xff]  ;;  %v112_v41 = vld [vmem:[#allocation3 + $0x240] sm:$0xff] }
  0x13   :  { %234 = vmatpush.xpose.msra.mxu2 %v81_v20  ;;  %254 = vmatpush.xpose.msra.mxu3 %v127_v21  ;;  %v66_v40 = vld [vmem:[#allocation3 + $0xd0] sm:$0xff]  ;;  %v47_v43 = vld [vmem:[#allocation3 + $0x38] sm:$0xff]  ;;  %v109_v45 = vld [vmem:[#allocation3 + $0x228] sm:$0xff] }
  0x14   :  { %v46_v42 = vld [vmem:[#allocation3 + $0x30] sm:$0xff]  ;;  %v63_v44 = vld [vmem:[#allocation3 + $0xb8] sm:$0xff]  ;;  %v44_v47 = vld [vmem:[#allocation3 + $0x20] sm:$0xff] }
  0x15   :  { %v43_v46 = vld [vmem:[#allocation3 + $0x18] sm:$0xff]  ;;  %v60_v48 = vld [vmem:[#allocation3 + $0xa0] sm:$0xff]  ;;  %v106_v49 = vld [vmem:[#allocation3 + $0x210] sm:$0xff] }
  0x16   :  { %196 = vmatpush.xpose.msra.mxu0 %v73_v8  ;;  %216 = vmatpush.xpose.msra.mxu1 %v74_v9  ;;  %v40_v50 = vld [vmem:[#allocation3] sm:$0xff]  ;;  %v41_v51 = vld [vmem:[#allocation3 + $0x8] sm:$0xff]  ;;  %v134_v52 = vld [vmem:[#allocation3 + $0x2f0] sm:$0xff] }
  0x17   :  { %235 = vmatpush.xpose.msra.mxu2 %v78_v24  ;;  %255 = vmatpush.xpose.msra.mxu3 %v124_v25  ;;  %v135_v53 = vld [vmem:[#allocation3 + $0x2f8] sm:$0xff]  ;;  %v57_v54 = vld [vmem:[#allocation3 + $0x88] sm:$0xff]  ;;  %v132_v57 = vld [vmem:[#allocation3 + $0x2e0] sm:$0xff] }
  0x18   :  { %v103_v55 = vld [vmem:[#allocation3 + $0x1f8] sm:$0xff]  ;;  %v54_v58 = vld [vmem:[#allocation3 + $0x70] sm:$0xff]  ;;  %v100_v59 = vld [vmem:[#allocation3 + $0x1e0] sm:$0xff] }
  0x19   :  { %v131_v56 = vld [vmem:[#allocation3 + $0x2d8] sm:$0xff]  ;;  %v128_v60 = vld [vmem:[#allocation3 + $0x2c0] sm:$0xff]  ;;  %v129_v61 = vld [vmem:[#allocation3 + $0x2c8] sm:$0xff] }
  0x1a   :  { %197 = vmatpush.xpose.msra.mxu0 %v70_v10  ;;  %217 = vmatpush.xpose.msra.mxu1 %v71_v11  ;;  %v51_v62 = vld [vmem:[#allocation3 + $0x58] sm:$0xff]  ;;  %v97_v63 = vld [vmem:[#allocation3 + $0x1c8] sm:$0xff]  ;;  %v126_v1 = vld [vmem:[#allocation3 + $0x2b0] sm:$0xff] }
  0x1b   :  { %236 = vmatpush.xpose.msra.mxu2 %v75_v28  ;;  %256 = vmatpush.xpose.msra.mxu3 %v121_v29  ;;  %v125_v0 = vld [vmem:[#allocation3 + $0x2a8] sm:$0xff]  ;;  %v48_v2 = vld [vmem:[#allocation3 + $0x40] sm:$0xff]  ;;  %v94_v3 = vld [vmem:[#allocation3 + $0x1b0] sm:$0xff] }
  0x1c   :  { %v122_v4 = vld [vmem:[#allocation3 + $0x290] sm:$0xff]  ;;  %v123_v5 = vld [vmem:[#allocation3 + $0x298] sm:$0xff]  ;;  %v45_v6 = vld [vmem:[#allocation3 + $0x28] sm:$0xff] }
  0x1d   :  { %v91_v7 = vld [vmem:[#allocation3 + $0x198] sm:$0xff]  ;;  %v39_v8 = vld [vmem:[%s533_s0] sm:$0x3f]  ;;  %v120_v10 = vld [vmem:[#allocation3 + $0x280] sm:$0xff] }
  0x1e   :  { %198 = vmatpush.xpose.msra.mxu0 %v67_v14  ;;  %218 = vmatpush.xpose.msra.mxu1 %v68_v15  ;;  %185 = vst [vmem:[#allocation1] ss:$4 sm:$0xff] %v39_v8  ;;  %v119_v9 = vld [vmem:[#allocation3 + $0x278] sm:$0xff]  ;;  %v42_v11 = vld [vmem:[#allocation3 + $0x10] sm:$0xff]  ;;  %v88_v12 = vld [vmem:[#allocation3 + $0x180] sm:$0xff] }
  0x1f   :  { %237 = vmatpush.xpose.msra.mxu2 %v72_v32  ;;  %257 = vmatpush.xpose.msra.mxu3 %v118_v33  ;;  %v181_v13 = vld [vmem:[#allocation3 + $0x468] sm:$0xff]  ;;  %v182_v14 = vld [vmem:[#allocation3 + $0x470] sm:$0xff]  ;;  %v116_v15 = vld [vmem:[#allocation3 + $0x260] sm:$0xff] }
  0x20   :  { %v117_v16 = vld [vmem:[#allocation3 + $0x268] sm:$0xff]  ;;  %v114_v21 = vld [vmem:[#allocation3 + $0x250] sm:$0xff]  ;;  %v175_v24 = vld [vmem:[#allocation3 + $0x438] sm:$0xff] }
  0x21   :  { %v176_v25 = vld [vmem:[#allocation3 + $0x440] sm:$0xff]  ;;  %v173_v29 = vld [vmem:[#allocation3 + $0x428] sm:$0xff]  ;;  %v170_v33 = vld [vmem:[#allocation3 + $0x410] sm:$0xff] }
  0x22   :  { %199 = vmatpush.xpose.msra.mxu0 %v64_v18  ;;  %219 = vmatpush.xpose.msra.mxu1 %v65_v19  ;;  %v113_v18 = vld [vmem:[#allocation3 + $0x248] sm:$0xff]  ;;  %v172_v28 = vld [vmem:[#allocation3 + $0x420] sm:$0xff] }
  0x23   :  { %238 = vmatpush.xpose.msra.mxu2 %v69_v36  ;;  %258 = vmatpush.xpose.msra.mxu3 %v115_v37  ;;  %v169_v32 = vld [vmem:[#allocation3 + $0x408] sm:$0xff]  ;;  %v166_v36 = vld [vmem:[#allocation3 + $0x3f0] sm:$0xff]  ;;  %v167_v37 = vld [vmem:[#allocation3 + $0x3f8] sm:$0xff] }
  0x24   :  { %v136_v8 = vld [vmem:[#allocation3 + $0x300] sm:$0xff] }
  0x25   :  { %v500_v17 = vld.sshfl [vmem:[#allocation1] sm:$0xff pattern:$0x73625140]  ;;  %v503_v19 = vld.sshfl [vmem:[#allocation1 + $0x8] sm:$0xff pattern:$0x73625140] }
  0x26   :  { %200 = vmatpush.xpose.msra.mxu0 %v61_v22  ;;  %220 = vmatpush.xpose.msra.mxu1 %v62_v23  ;;  %v505_v20 = vld.sshfl [vmem:[#allocation1 + $0x10] sm:$0xff pattern:$0x73625140]  ;;  %v178_v22 = vld [vmem:[#allocation3 + $0x450] sm:$0xff]  ;;  %v179_v23 = vld [vmem:[#allocation3 + $0x458] sm:$0xff] }
  0x27   :  { %239 = vmatpush.xpose.msra.mxu2 %v66_v40  ;;  %259 = vmatpush.xpose.msra.mxu3 %v112_v41  ;;  %v163_v40 = vld [vmem:[#allocation3 + $0x3d8] sm:$0xff]  ;;  %v164_v41 = vld [vmem:[#allocation3 + $0x3e0] sm:$0xff] }
  0x2a   :  { %201 = vmatpush.xpose.msra.mxu0 %v58_v26  ;;  %221 = vmatpush.xpose.msra.mxu1 %v59_v27  ;;  %v110_v26 = vld [vmem:[#allocation3 + $0x230] sm:$0xff]  ;;  %v111_v27 = vld [vmem:[#allocation3 + $0x238] sm:$0xff] }
  0x2b   :  { %240 = vmatpush.xpose.msra.mxu2 %v63_v44  ;;  %260 = vmatpush.xpose.msra.mxu3 %v109_v45  ;;  %v160_v44 = vld [vmem:[#allocation3 + $0x3c0] sm:$0xff]  ;;  %v161_v45 = vld [vmem:[#allocation3 + $0x3c8] sm:$0xff] }
  0x2e   :  { %202 = vmatpush.xpose.msra.mxu0 %v55_v30  ;;  %222 = vmatpush.xpose.msra.mxu1 %v56_v31  ;;  %v107_v30 = vld [vmem:[#allocation3 + $0x218] sm:$0xff]  ;;  %v108_v31 = vld [vmem:[#allocation3 + $0x220] sm:$0xff] }
  0x2f   :  { %241 = vmatpush.xpose.msra.mxu2 %v60_v48  ;;  %261 = vmatpush.xpose.msra.mxu3 %v106_v49  ;;  %v157_v48 = vld [vmem:[#allocation3 + $0x3a8] sm:$0xff]  ;;  %v158_v49 = vld [vmem:[#allocation3 + $0x3b0] sm:$0xff] }
  0x32   :  { %203 = vmatpush.xpose.msra.mxu0 %v52_v34  ;;  %223 = vmatpush.xpose.msra.mxu1 %v53_v35  ;;  %v104_v34 = vld [vmem:[#allocation3 + $0x200] sm:$0xff]  ;;  %v105_v35 = vld [vmem:[#allocation3 + $0x208] sm:$0xff] }
  0x33   :  { %242 = vmatpush.xpose.msra.mxu2 %v57_v54  ;;  %262 = vmatpush.xpose.msra.mxu3 %v103_v55  ;;  %v89_v54 = vld [vmem:[#allocation3 + $0x188] sm:$0xff]  ;;  %v90_v55 = vld [vmem:[#allocation3 + $0x190] sm:$0xff] }
  0x36   :  { %204 = vmatpush.xpose.msra.mxu0 %v49_v38  ;;  %224 = vmatpush.xpose.msra.mxu1 %v50_v39  ;;  %v101_v38 = vld [vmem:[#allocation3 + $0x1e8] sm:$0xff]  ;;  %v102_v39 = vld [vmem:[#allocation3 + $0x1f0] sm:$0xff] }
  0x37   :  { %243 = vmatpush.xpose.msra.mxu2 %v54_v58  ;;  %263 = vmatpush.xpose.msra.mxu3 %v100_v59  ;;  %v152_v58 = vld [vmem:[#allocation3 + $0x380] sm:$0xff] }
  0x38   :  { %v180_v59 = vld [vmem:[#allocation3 + $0x460] sm:$0xff] }
  0x3a   :  { %205 = vmatpush.xpose.msra.mxu0 %v46_v42  ;;  %225 = vmatpush.xpose.msra.mxu1 %v47_v43  ;;  %v98_v42 = vld [vmem:[#allocation3 + $0x1d0] sm:$0xff]  ;;  %v99_v43 = vld [vmem:[#allocation3 + $0x1d8] sm:$0xff] }
  0x3b   :  { %244 = vmatpush.xpose.msra.mxu2 %v51_v62  ;;  %264 = vmatpush.xpose.msra.mxu3 %v97_v63  ;;  %v177_v62 = vld [vmem:[#allocation3 + $0x448] sm:$0xff] }
  0x3c   :  { %v145_v63 = vld [vmem:[#allocation3 + $0x348] sm:$0xff] }
  0x3e   :  { %206 = vmatpush.xpose.msra.mxu0 %v43_v46  ;;  %226 = vmatpush.xpose.msra.mxu1 %v44_v47  ;;  %v95_v46 = vld [vmem:[#allocation3 + $0x1b8] sm:$0xff]  ;;  %v96_v47 = vld [vmem:[#allocation3 + $0x1c0] sm:$0xff] }
  0x3f   :  { %245 = vmatpush.xpose.msra.mxu2 %v48_v2  ;;  %265 = vmatpush.xpose.msra.mxu3 %v94_v3  ;;  %v142_v2 = vld [vmem:[#allocation3 + $0x330] sm:$0xff]  ;;  %v143_v3 = vld [vmem:[#allocation3 + $0x338] sm:$0xff] }
  0x42   :  { %207 = vmatpush.xpose.msra.mxu0 %v40_v50  ;;  %227 = vmatpush.xpose.msra.mxu1 %v41_v51  ;;  %v92_v50 = vld [vmem:[#allocation3 + $0x1a0] sm:$0xff]  ;;  %v93_v51 = vld [vmem:[#allocation3 + $0x1a8] sm:$0xff] }
  0x43   :  { %246 = vmatpush.xpose.msra.mxu2 %v45_v6  ;;  %266 = vmatpush.xpose.msra.mxu3 %v91_v7  ;;  %v140_v6 = vld [vmem:[#allocation3 + $0x320] sm:$0xff] }
  0x44   :  { %v168_v7 = vld [vmem:[#allocation3 + $0x400] sm:$0xff] }
  0x45   :  { %208 = vmatmul.f32.vlgmr.msra.gmra.mxu0 %v500_v17  ;;  %228 = vmatmul.f32.vlgmr.msra.gmra.mxu1 %v503_v19 }
  0x46   :  { %272 = vmatpush.xpose.msrb.mxu0 %v134_v52  ;;  %292 = vmatpush.xpose.msrb.mxu1 %v135_v53  ;;  %v154_v52 = vld [vmem:[#allocation3 + $0x390] sm:$0xff]  ;;  %v155_v53 = vld [vmem:[#allocation3 + $0x398] sm:$0xff] }
  0x47   :  { %247 = vmatpush.xpose.msra.mxu2 %v42_v11  ;;  %267 = vmatpush.xpose.msra.mxu3 %v88_v12  ;;  %v162_v11 = vld [vmem:[#allocation3 + $0x3d0] sm:$0xff]  ;;  %v159_v12 = vld [vmem:[#allocation3 + $0x3b8] sm:$0xff] }
  0x4a   :  { %273 = vmatpush.xpose.msrb.mxu0 %v131_v56  ;;  %293 = vmatpush.xpose.msrb.mxu1 %v132_v57  ;;  %v183_v56 = vld [vmem:[#allocation3 + $0x478] sm:$0xff] }
  0x4b   :  { %312 = vmatpush.xpose.msrb.mxu2 %v181_v13  ;;  %332 = vmatpush.xpose.msrb.mxu3 %v182_v14  ;;  %v151_v57 = vld [vmem:[#allocation3 + $0x378] sm:$0xff]  ;;  %v156_v13 = vld [vmem:[#allocation3 + $0x3a0] sm:$0xff]  ;;  %v153_v14 = vld [vmem:[#allocation3 + $0x388] sm:$0xff] }
  0x4c   :  { %248 = vmatmul.f32.vlgmr.msra.gmra.mxu2 %v505_v20  ;;  %268 = vmatmul.f32.vlgmr.msra.gmra.mxu3 %v500_v17 }
  0x4e   :  { %274 = vmatpush.xpose.msrb.mxu0 %v128_v60  ;;  %294 = vmatpush.xpose.msrb.mxu1 %v129_v61  ;;  %v148_v60 = vld [vmem:[#allocation3 + $0x360] sm:$0xff]  ;;  %v149_v61 = vld [vmem:[#allocation3 + $0x368] sm:$0xff] }
  0x4f   :  { %313 = vmatpush.xpose.msrb.mxu2 %v178_v22  ;;  %333 = vmatpush.xpose.msrb.mxu3 %v179_v23  ;;  %v138_v22 = vld [vmem:[#allocation3 + $0x310] sm:$0xff] }
  0x52   :  { %275 = vmatpush.xpose.msrb.mxu0 %v125_v0  ;;  %295 = vmatpush.xpose.msrb.mxu1 %v126_v1  ;;  %v146_v0 = vld [vmem:[#allocation3 + $0x350] sm:$0xff] }
  0x53   :  { %314 = vmatpush.xpose.msrb.mxu2 %v175_v24  ;;  %334 = vmatpush.xpose.msrb.mxu3 %v176_v25  ;;  %v174_v1 = vld [vmem:[#allocation3 + $0x430] sm:$0xff] }
  0x56   :  { %276 = vmatpush.xpose.msrb.mxu0 %v122_v4  ;;  %296 = vmatpush.xpose.msrb.mxu1 %v123_v5  ;;  %v171_v4 = vld [vmem:[#allocation3 + $0x418] sm:$0xff] }
  0x57   :  { %315 = vmatpush.xpose.msrb.mxu2 %v172_v28  ;;  %335 = vmatpush.xpose.msrb.mxu3 %v173_v29  ;;  %v139_v5 = vld [vmem:[#allocation3 + $0x318] sm:$0xff] }
  0x5a   :  { %277 = vmatpush.xpose.msrb.mxu0 %v119_v9  ;;  %297 = vmatpush.xpose.msrb.mxu1 %v120_v10  ;;  %v137_v9 = vld [vmem:[#allocation3 + $0x308] sm:$0xff] }
  0x5b   :  { %316 = vmatpush.xpose.msrb.mxu2 %v169_v32  ;;  %336 = vmatpush.xpose.msrb.mxu3 %v170_v33  ;;  %v165_v10 = vld [vmem:[#allocation3 + $0x3e8] sm:$0xff] }
  0x5e   :  { %278 = vmatpush.xpose.msrb.mxu0 %v116_v15  ;;  %298 = vmatpush.xpose.msrb.mxu1 %v117_v16  ;;  %v150_v15 = vld [vmem:[#allocation3 + $0x370] sm:$0xff]  ;;  %v147_v16 = vld [vmem:[#allocation3 + $0x358] sm:$0xff] }
  0x5f   :  { %317 = vmatpush.xpose.msrb.mxu2 %v166_v36  ;;  %337 = vmatpush.xpose.msrb.mxu3 %v167_v37 }
  0x62   :  { %279 = vmatpush.xpose.msrb.mxu0 %v113_v18  ;;  %299 = vmatpush.xpose.msrb.mxu1 %v114_v21  ;;  %v144_v18 = vld [vmem:[#allocation3 + $0x340] sm:$0xff]  ;;  %v141_v21 = vld [vmem:[#allocation3 + $0x328] sm:$0xff] }
  0x63   :  { %318 = vmatpush.xpose.msrb.mxu2 %v163_v40  ;;  %338 = vmatpush.xpose.msrb.mxu3 %v164_v41 }
  0x66   :  { %280 = vmatpush.xpose.msrb.mxu0 %v110_v26  ;;  %300 = vmatpush.xpose.msrb.mxu1 %v111_v27 }
  0x67   :  { %319 = vmatpush.xpose.msrb.mxu2 %v160_v44  ;;  %339 = vmatpush.xpose.msrb.mxu3 %v161_v45 }
  0x6a   :  { %281 = vmatpush.xpose.msrb.mxu0 %v107_v30  ;;  %301 = vmatpush.xpose.msrb.mxu1 %v108_v31 }
  0x6b   :  { %320 = vmatpush.xpose.msrb.mxu2 %v157_v48  ;;  %340 = vmatpush.xpose.msrb.mxu3 %v158_v49 }
  0x6e   :  { %282 = vmatpush.xpose.msrb.mxu0 %v104_v34  ;;  %302 = vmatpush.xpose.msrb.mxu1 %v105_v35  ;;  %v388_v34 = vld [vmem:[%s535_s2] sm:$0x7] }
  0x6f   :  { %321 = vmatpush.xpose.msrb.mxu2 %v154_v52  ;;  %341 = vmatpush.xpose.msrb.mxu3 %v155_v53  ;;  %v390_v45 = vperm.slane %v388_v34, 0 }
  0x72   :  { %283 = vmatpush.xpose.msrb.mxu0 %v101_v38  ;;  %303 = vmatpush.xpose.msrb.mxu1 %v102_v39  ;;  %v391_v38 = vperm.slane %v388_v34, 1 }
  0x73   :  { %322 = vmatpush.xpose.msrb.mxu2 %v151_v57  ;;  %342 = vmatpush.xpose.msrb.mxu3 %v152_v58 }
  0x76   :  { %284 = vmatpush.xpose.msrb.mxu0 %v98_v42  ;;  %304 = vmatpush.xpose.msrb.mxu1 %v99_v43  ;;  %v392_v43 = vperm.slane %v388_v34, 2 }
  0x77   :  { %323 = vmatpush.xpose.msrb.mxu2 %v148_v60  ;;  %343 = vmatpush.xpose.msrb.mxu3 %v149_v61 }
  0x78   :  { %v394_v48 = vrot.slane %v392_v43, 4 }
  0x7a   :  { %285 = vmatpush.xpose.msrb.mxu0 %v95_v46  ;;  %305 = vmatpush.xpose.msrb.mxu1 %v96_v47  ;;  %v393_v46 = vrot.slane %v391_v38, 6  ;;  %v400_v47 = vld [vmem:[%s536_s3] sm:$0x7] }
  0x7b   :  { %324 = vmatpush.xpose.msrb.mxu2 %v145_v63  ;;  %344 = vmatpush.xpose.msrb.mxu3 %v146_v0  ;;  %v404_v52 = vperm.slane %v400_v47, 2 }
  0x7c   :  { %v395_v49 = vsel %vm377_vm0, %v390_v45, %v393_v46 }
  0x7d   :  { %v406_v57 = vrot.slane %v404_v52, 4 }
  0x7e   :  { %286 = vmatpush.xpose.msrb.mxu0 %v92_v50  ;;  %306 = vmatpush.xpose.msrb.mxu1 %v93_v51  ;;  %v403_v50 = vperm.slane %v400_v47, 1  ;;  %v396_v51 = vsel %vm379_vm1, %v395_v49, %v394_v48 }
  0x7f   :  { %325 = vmatpush.xpose.msrb.mxu2 %v142_v2  ;;  %345 = vmatpush.xpose.msrb.mxu3 %v143_v3 }
  0x82   :  { %287 = vmatpush.xpose.msrb.mxu0 %v89_v54  ;;  %307 = vmatpush.xpose.msrb.mxu1 %v90_v55  ;;  %v402_v54 = vperm.slane %v400_v47, 0  ;;  %v405_v55 = vrot.slane %v403_v50, 6 }
  0x83   :  { %326 = vmatpush.xpose.msrb.mxu2 %v139_v5  ;;  %346 = vmatpush.xpose.msrb.mxu3 %v140_v6 }
  0x84   :  { %v407_v58 = vsel %vm377_vm0, %v402_v54, %v405_v55 }
  0x85   :  { %288 = vmatmul.f32.vlgmr.msrb.gmra.mxu0 %v503_v19  ;;  %308 = vmatmul.f32.vlgmr.msrb.gmra.mxu1 %v505_v20 }
  0x86   :  { %352 = vmatpush.xpose.msra.mxu0 %v183_v56 }
  0x87   :  { %327 = vmatpush.xpose.msrb.mxu2 %v136_v8  ;;  %347 = vmatpush.xpose.msrb.mxu3 %v137_v9 }
  0x8a   :  { %353 = vmatpush.xpose.msra.mxu0 %v180_v59  ;;  %328 = vmatmul.f32.vlgmr.msrb.gmra.mxu2 %v500_v17  ;;  %v468_v17 = vmov 0.0   ;;  %v408_v59 = vsel %vm379_vm1, %v407_v58, %v406_v57 }
  0x8b   :  { %348 = vmatmul.f32.vlgmr.msrb.gmra.mxu3 %v503_v19  ;;  %37 = vst [vmem:[#allocation2] sm:$0x3f] %v468_v17 }
  0x8e   :  { %354 = vmatpush.xpose.msra.mxu0 %v177_v62 }
  0x92   :  { %355 = vmatpush.xpose.msra.mxu0 %v174_v1  ;;  %v38_v39 = vld [vmem:[#allocation2] sm:$0x3f] }
  0x96   :  { %356 = vmatpush.xpose.msra.mxu0 %v171_v4 }
  0x9a   :  { %357 = vmatpush.xpose.msra.mxu0 %v168_v7 }
  0x9e   :  { %358 = vmatpush.xpose.msra.mxu0 %v165_v10 }
  0xa2   :  { %359 = vmatpush.xpose.msra.mxu0 %v162_v11 }
  0xa6   :  { %360 = vmatpush.xpose.msra.mxu0 %v159_v12 }
  0xaa   :  { %361 = vmatpush.xpose.msra.mxu0 %v156_v13 }
  0xae   :  { %362 = vmatpush.xpose.msra.mxu0 %v153_v14 }
  0xb2   :  { %363 = vmatpush.xpose.msra.mxu0 %v150_v15 }
  0xb6   :  { %364 = vmatpush.xpose.msra.mxu0 %v147_v16 }
  0xba   :  { %365 = vmatpush.xpose.msra.mxu0 %v144_v18 }
  0xbe   :  { %366 = vmatpush.xpose.msra.mxu0 %v141_v21 }
  0xc2   :  { %367 = vmatpush.xpose.msra.mxu0 %v138_v22  ;;  %v209_v19 = vpop.f32.mrf.mxu0  ;;  %v229_v23 = vpop.f32.mrf.mxu1 }
  0xc3   :  { %v230_v33 = vadd.f32 %v229_v23, %v209_v19 }
  0xc5   :  { %368 = vmatmul.f32.vlgmr.msra.gmra.mxu0 %v505_v20 }
  0xcf   :  { %v249_v24 = vpop.f32.mrf.mxu2  ;;  %v269_v25 = vpop.f32.mrf.mxu3 }
  0xd0   :  { %v250_v37 = vadd.f32 %v249_v24, %v230_v33 }
 0x102   :  { %v289_v26 = vpop.f32.mrf.mxu0  ;;  %v309_v28 = vpop.f32.mrf.mxu1 }
 0x103   :  { %v290_v27 = vadd.f32 %v289_v26, %v269_v25 }
 0x105   :  { %v310_v31 = vadd.f32 %v309_v28, %v290_v27 }
 0x107   :  { %v375_v35 = vrot.slane %v310_v31, 6 }
 0x109   :  { %v378_v41 = vsel %vm377_vm0, %v250_v37, %v375_v35 }
 0x10d   :  { %v329_v29 = vpop.f32.mrf.mxu2 }
 0x10e   :  { %v349_v30 = vpop.f32.mrf.mxu3 }
 0x10f   :  { %v350_v32 = vadd.f32 %v349_v30, %v329_v29 }
 0x142   :  { %v369_v20 = vpop.f32.mrf.mxu0 }
 0x143   :  { %v370_v36 = vadd.f32 %v369_v20, %v350_v32 }
 0x145   :  { %v376_v40 = vrot.slane %v370_v36, 4 }
 0x147   :  { %v380_v42 = vsel %vm379_vm1, %v378_v41, %v376_v40 }
 0x148   :  { %v382_v44 = vadd.f32 %v380_v42, %v38_v39 }
 0x14a   :  { %383 = vst [vmem:[#allocation2] sm:$0x3f] %v382_v44 }
 0x151   :  { %v387_v53 = vld [vmem:[#allocation2] sm:$0x3f] }
 0x152   :  { %v398_v56 = vadd.f32 %v396_v51, %v387_v53 }
 0x154   :  { %437 = vtanh.f32 %v398_v56 }
 0x15a   :  { %v438_v60 = vpop.eup %437 }
 0x15b   :  { %v410_v61 = vmul.f32 %v438_v60, %v408_v59 }
 0x15d   :  { %412 = vst [vmem:[#allocation1] ss:$4 sm:$0xff] %v410_v61 }
 0x164   :  { %v413_v62 = vld.sshfl [vmem:[#allocation1] sm:$0xff pattern:$0x73625140]  ;;  %v414_v63 = vld.sshfl [vmem:[#allocation1 + $0x8] sm:$0xff pattern:$0x73625140] }
 0x165   :  { %v415_v0 = vld.sshfl [vmem:[#allocation1 + $0x10] sm:$0xff pattern:$0x73625140]  ;;  %v419_v1 = vsel %vm377_vm0, %v413_v62, 0.0  ;;  %v420_v2 = vsel %vm377_vm0, %v414_v63, 0.0 }
 0x166   :  { %v421_v3 = vadd.f32 %v420_v2, %v419_v1  ;;  %v422_v4 = vsel %vm377_vm0, %v415_v0, 0.0 }
 0x168   :  { %v423_v5 = vadd.f32 %v422_v4, %v421_v3 }
 0x16a   :  { %424 = vadd.xlane.f32.xlu0 %v423_v5 }
 0x1dd   :  { %v425_v6 = vpop.xlane.xlu0 %424 }
 0x1de   :  { %427 = vst.msk [vmem:[%s537_s4] sm:$0x3] %vm426_vm2, %v425_v6 }
 0x1df   :  { %432 = vsyncpa [#allocation4], 1 }

</bundles_post_ra>
